<compile_context>
chip_gen: v6e
topology: v6e:2x2x1
jax: 0.10.0
libtpu: 0.0.40
codegen_flags: <defaults>
</compile_context>

<pallas_src>
import jax
import jax.numpy as jnp
from jax import lax
from jax.experimental import pallas as pl
from jax.experimental.pallas import tpu as pltpu

IN_FEATURES = 8
OUT_FEATURES = 8


def linear_add_kernel(x_ref, p_ref, o_ref):
    # x_ref: (B, IN)        VMEM
    # p_ref: (OUT + 1, IN)  VMEM  rows 0..OUT-1 = weight (PyTorch (out,in) layout)
    #                             row  OUT      = bias + other, fused at init time
    #                             (row packing relies on OUT == IN == 8)
    # o_ref: (B, OUT)       VMEM
    w = p_ref[0:OUT_FEATURES, :]                       # (OUT, IN) static slice
    b = p_ref[OUT_FEATURES:OUT_FEATURES + 1, :]        # (1, OUT)  static slice

    # x @ W^T on the MXU, f32 accumulate. (A VPU broadcast-mul + lane-reduce
    # path would shave a few tens of cycles on v5e/v6e for B=1, but the MXU
    # path is kept for robustness; the epilogue add is free under slack.)
    acc = lax.dot_general(
        x_ref[...], w,
        dimension_numbers=(((1,), (1,)), ((), ())),
        preferred_element_type=jnp.float32,
    )
    o_ref[...] = (acc + b).astype(o_ref.dtype)


def pack_params(weight, bias, other=1.0):
    """ONE-TIME (init-time) parameter packing.

    Returns a single (OUT+1, IN) buffer: rows 0..OUT-1 hold the PyTorch-layout
    weight, row OUT holds (bias + other). Doing the `+ other` fold here (not in
    the per-call wrapper) removes a per-call XLA op; packing into one array
    halves the number of tiny parameter DMAs per call.
    """
    fused = (bias + jnp.asarray(other, dtype=bias.dtype)).reshape(1, IN_FEATURES)
    return jnp.concatenate([weight.astype(bias.dtype), fused], axis=0)


@jax.jit
def model_forward(x, params):
    """x: (B, 8) f32; params: (9, 8) f32 from pack_params()."""
    B = x.shape[0]
    return pl.pallas_call(
        linear_add_kernel,
        out_shape=jax.ShapeDtypeStruct((B, OUT_FEATURES), x.dtype),
        in_specs=[
            pl.BlockSpec(memory_space=pltpu.MemorySpace.VMEM),   # x
            pl.BlockSpec(memory_space=pltpu.MemorySpace.VMEM),   # packed params
        ],
        out_specs=pl.BlockSpec(memory_space=pltpu.MemorySpace.VMEM),
    )(x, params)


if __name__ == "__main__":
    key = jax.random.PRNGKey(0)
    kx, kw, kb = jax.random.split(key, 3)

    # Input matching the module: x1 = torch.randn(1, 8)
    x = jax.random.normal(kx, (1, IN_FEATURES), dtype=jnp.float32)

    # Deterministic nn.Linear(8, 8)-style init: U(-1/sqrt(8), 1/sqrt(8))
    bound = 1.0 / jnp.sqrt(float(IN_FEATURES))
    weight = jax.random.uniform(kw, (OUT_FEATURES, IN_FEATURES), jnp.float32, -bound, bound)
    bias = jax.random.uniform(kb, (OUT_FEATURES,), jnp.float32, -bound, bound)

    # Parameter packing happens ONCE ("module init"), not per forward call.
    params = pack_params(weight, bias, other=1.0)
    params = jax.block_until_ready(params)

    out = model_forward(x, params)
    out = jax.block_until_ready(out)

    # Reference check in plain JAX
    ref = x @ weight.T + bias + 1.0
    assert out.shape == (1, OUT_FEATURES)
    assert jnp.allclose(out, ref, atol=1e-5, rtol=1e-5), (out, ref)

    print("KERNEL_OK")
</pallas_src>

<mosaic_0001>
module attributes {stable_mosaic.version = 11 : i64} {
  func.func @linear_add_kernel(%arg0: memref<1x8xf32, #tpu.memory_space<vmem>>, %arg1: memref<9x8xf32, #tpu.memory_space<vmem>>, %arg2: memref<1x8xf32, #tpu.memory_space<vmem>>) attributes {dimension_semantics = [], scalar_prefetch = 0 : i64, scratch_operands = 0 : i64, tpu.core_type = #tpu.core_type<tc>} {
    %c0 = arith.constant 0 : index
    %c0_0 = arith.constant 0 : index
    %0 = vector.load %arg1[%c0, %c0_0] : memref<9x8xf32, #tpu.memory_space<vmem>>, vector<8x8xf32>
    %c8 = arith.constant 8 : index
    %c0_1 = arith.constant 0 : index
    %1 = vector.load %arg1[%c8, %c0_1] : memref<9x8xf32, #tpu.memory_space<vmem>>, vector<1x8xf32>
    %c0_2 = arith.constant 0 : index
    %c0_3 = arith.constant 0 : index
    %2 = vector.load %arg0[%c0_2, %c0_3] : memref<1x8xf32, #tpu.memory_space<vmem>>, vector<1x8xf32>
    %cst = arith.constant dense<0.000000e+00> : vector<1x8xf32>
    %3 = tpu.matmul %2, %0, %cst {dimension_numbers = #tpu.dot_dimension_numbers<[1], [1], [0], [0], [0, 0, 1, 0], [], []>} : vector<1x8xf32>, vector<8x8xf32>, vector<1x8xf32> -> vector<1x8xf32>
    %4 = arith.addf %3, %1 : vector<1x8xf32>
    %c0_4 = arith.constant 0 : index
    %c0_5 = arith.constant 0 : index
    %5 = vector.load %arg2[%c0_4, %c0_5] : memref<1x8xf32, #tpu.memory_space<vmem>>, vector<1x8xf32>
    tpu.vector_store %arg2[%c0_4, %c0_5], %4 {strides = array<i32>} : memref<1x8xf32, #tpu.memory_space<vmem>>, vector<1x8xf32>,
    return
  }
}

</mosaic_0001>

<bundles_post_ra>
// kernel: model_forward.1
= control target key start
LH: loop header
LB: loop body
LE: loop exit
PB: predicated region body
PF: predicated region fallthrough
CT: control target
= control target key end

     0   :  { %vm15_vm0 = vcmask 64512   ;;  %v142_v1 = vmov 0.0   ;;  %vm143_vm1 = vmmov 0   ;;  %s172_s0 = inlined_call_operand.vmem [shape: f32[1,8], index: 0, kind: input, shape index: {}]   ;;  %s173_s1 = inlined_call_operand.vmem [shape: f32[9,8], index: 1, kind: input, shape index: {}]   ;;  %s174_s2 = inlined_call_operand.hbm [shape: f32[1,8], index: 2, kind: output, shape index: {}]  }
   0x1   :  { %v12_v0 = vld [vmem:[%s173_s1] sm:$0xff]  ;;  %112 = vmatprep.subr.mxu0 %v142_v1  ;;  %114 = vmatprep.mubr.msk.f32.mxu0 %vm143_vm1, %v142_v1 }
   0x2   :  { %7 = vsyncpa [#allocation3], 0  ;;  %113 = vmatpush3.xpose.msk.msra.mxu0 %vm15_vm0, %v12_v0  ;;  %v14_v2 = vld [vmem:[%s172_s0] sm:$0x1]  ;;  %v13_v3 = vld [vmem:[%s173_s1 + $0x8] sm:$0x1] }
   0x3   :  { %s144_s15 = smov [#allocation2]   ;;  %vm92_vm2 = vcmask 57344  }
   0x4   :  { %s100_s16 = sshll.u32 %s144_s15, 4  ;;  %s101_s16 = int_to_ptr.vmem [resolvable:$true] %s100_s16 }
   0x5   :  { %115 = vmatmul.mubr.msk.f32.vlgmr.msra.gmra.mxu0 %vm15_vm0, %v14_v2  ;;  %s120_s17 = scalar_lea.vmem %s101_s16, 16  ;;  %s124_s18 = scalar_lea.vmem %s101_s16, 32 }
   0x6   :  { %p121_p0 = scmp.ne.s32.totalorder %s101_s16, %s120_s17  ;;  %p125_p1 = scmp.lt.s32.totalorder %s101_s16, %s101_s16 }
   0x7   :  { %p126_p2 = scmp.lt.s32.totalorder %s124_s18, %s120_s17 }
   0x9   :  { %p127_p3 = por %p126_p2, %p125_p1 }
   0xb   :  { %p128_p4 = pnand %p127_p3, %p121_p0 }
  0xc5   :  { %v88_v4 = vpop.f32.mrf.mxu0 }
  0xc6   :  { %v89_v5 = vadd.f32 %v88_v4, %v13_v3 }
  0xc7   :  { %v116_v6 = vpop.f32.mrf.mxu0 }
  0xc8   :  { %93 = vst.msk [vmem:[#allocation2] sm:$0x1] %vm92_vm2, %v89_v5 }
  0xc9   :  { %131 = shalt.err (!%p128_p4)
}
  0xca   :  { %103 = dma.vmem_to_hbm [thread:$0]  %s101_s16, 16, %s174_s2, [#allocation3]  }
  0xcb   :  { %140 = dma.done.wait [#allocation3], 16  }
  0xcc   :  { %141 = vsyncadd [#allocation3], 4294967280 }
  0xcd   :  { %107 = vsyncpa [#allocation3], 1 }

</bundles_post_ra>
